<compile_context>
chip_gen: v5e
topology: v5e:2x2
jax: 0.10.0
libtpu: 0.0.40
codegen_flags: <defaults>
</compile_context>

<pallas_src>
import jax
import jax.numpy as jnp
from jax.experimental import pallas as pl
from jax.experimental.pallas import tpu as pltpu


# ----------------------------- configuration -------------------------------
B = 2          # batch
C_HIS = 8      # args.n_his  (input temporal channels)
N_PRED = 4     # args.n_pred (output temporal channels == LSTM seq length)
N_NODE = 16    # node_num    (== LSTM input_size)
FEAT = 4       # args.features
HID = 32       # args.hidden_size
NUM_LAYER = 1  # args.num_layer (kernel implements the single-layer case)
SELF_LOOP = True
ENABLE_BIAS = True

H4 = 4 * HID
NP = N_NODE * N_PRED
FC = FEAT * C_HIS

assert NP <= H4, "param packing assumes fc width <= 4H"
assert FC <= H4 and N_NODE <= H4, "param packing assumes narrow operands fit 4H lanes"


def _align8(v):
    return ((v + 7) // 8) * 8


# row offsets inside the single packed parameter slab (all 4H = 128 lanes wide)
R_WIH = 0                            # (N, 4H)    LSTM input weights
R_WHH = R_WIH + N_NODE               # (H, 4H)    LSTM recurrent weights
R_WFC = R_WHH + HID                  # (H, 4H)    fc weights, lanes [:NP]
R_BIAS = R_WFC + HID                 # (B*P, 4H)  folded pre-LSTM bias (batch-major)
R_BFC = R_BIAS + B * N_PRED          # (1, 4H)    fc bias, lanes [:NP]
R_AHAT = _align8(R_BFC + 1)          # (N, 4H)    (adj+I)^T, lanes [:N]
R_W2 = R_AHAT + N_NODE               # (P, 4H)    folded lin+conv weight, lanes [:F*C]
R_TOT = _align8(R_W2 + N_PRED)       # total slab rows


# ------------------------------- the kernel --------------------------------
def dggnn_kernel(xk_ref, p_ref, out_ref):
    """Inputs (layout-plumbed by the wrapper):
      xk_ref  : (F*C, B*N) VMEM -- x transposed so N sits on the lane axis
      p_ref   : (R_TOT, 4H) VMEM -- packed parameter slab (see row offsets above)
      out_ref : (B, 4H)    VMEM -- lane-dense output; wrapper slices [:, :N*P]
    """
    f32 = jnp.float32

    # ---- 1. folded Linear(F->1) + graph-conv feature mix: one dot ----------
    w2 = p_ref[R_W2:R_W2 + N_PRED, 0:FC]                       # (P, F*C)
    r = jnp.dot(w2, xk_ref[...], preferred_element_type=f32)   # (P, B*N)

    # batch-major stack: row b*P + p  (two lane slices, one concat)
    r_stk = jnp.concatenate(
        [r[:, b * N_NODE:(b + 1) * N_NODE] for b in range(B)], axis=0)  # (B*P, N)

    # ---- 2. adjacency mix + hoisted LSTM input projection -------------------
    a_hat_t = p_ref[R_AHAT:R_AHAT + N_NODE, 0:N_NODE]          # (N, N)
    s0 = jnp.dot(r_stk, a_hat_t, preferred_element_type=f32)   # (B*P, N)

    w_ih = p_ref[R_WIH:R_WIH + N_NODE, :]                      # (N, 4H)
    bias = p_ref[R_BIAS:R_BIAS + B * N_PRED, :]                # (B*P, 4H) folded bias
    g_all = jnp.dot(s0, w_ih, preferred_element_type=f32) + bias  # (B*P, 4H)

    # ---- 3. LSTM recurrence: one full-width dot per step --------------------
    w_hh = p_ref[R_WHH:R_WHH + HID, :]                          # (H, 4H)

    h = jnp.zeros((B, HID), f32)
    c = jnp.zeros((B, HID), f32)
    for t in range(N_PRED):                                     # static unroll (4)
        gx = jnp.concatenate(
            [g_all[b * N_PRED + t:b * N_PRED + t + 1, :] for b in range(B)],
            axis=0)                                             # (B, 4H)
        gates = gx + jnp.dot(h, w_hh, preferred_element_type=f32)   # (B, 4H)
        i_g = jax.nn.sigmoid(gates[:, 0 * HID:1 * HID])
        f_g = jax.nn.sigmoid(gates[:, 1 * HID:2 * HID])
        g_g = jnp.tanh(gates[:, 2 * HID:3 * HID])
        o_g = jax.nn.sigmoid(gates[:, 3 * HID:4 * HID])
        c = f_g * c + i_g * g_g
        h = o_g * jnp.tanh(c)

    # ---- 4. fc at padded (lane-dense) width ---------------------------------
    w_fc = p_ref[R_WFC:R_WFC + HID, :]                          # (H, 4H), [:, :NP] real
    b_fc = p_ref[R_BFC:R_BFC + 1, :]                            # (1, 4H)
    out_ref[...] = jnp.dot(h, w_fc, preferred_element_type=f32) + b_fc


# ------------------------------- wrapper ------------------------------------
@jax.jit
def dggnn_forward(x, adj, params):
    f32 = jnp.float32
    BN = B * N_NODE

    # ---- layout plumbing + constant folding (wrapper-side only) -------------
    # x: (B, C, N, F) -> (F*C, B*N) so N sits on the lane axis in-kernel
    xk = jnp.transpose(x, (3, 1, 0, 2)).reshape(FC, BN)

    a_hat = adj + (jnp.eye(N_NODE, dtype=f32) if SELF_LOOP else 0.0)
    a_hat_t = a_hat.T

    # fold Linear(F->1) weight into the graph-conv weight:
    #   W2[p, f*C+c] = w_lin[f] * w_g[c, p]
    w_lin = params["w_lin"][0]                                   # (F,)
    w_g = params["w_g"]                                          # (C, P)
    w2 = (w_lin[:, None, None] * w_g[None, :, :]).transpose(2, 0, 1).reshape(N_PRED, FC)

    # fold ALL pre-LSTM bias terms (the affine path evaluated at x = 0) into one
    # (B*P, 4H) slab added after the input-projection dot.
    b_lin = params["b_lin"][0, 0]
    cst = b_lin * w_g.sum(axis=0)                                # (P,)
    row_sum_ahat = a_hat.sum(axis=1)                             # (N,)
    s_bias = cst[:, None] * row_sum_ahat[None, :] + params["b_g"][0][:, None]  # (P, N)
    g_bias = s_bias @ params["w_ih"] + (params["b_ih"] + params["b_hh"])        # (P, 4H)
    bias_gall = jnp.concatenate([g_bias] * B, axis=0)            # (B*P, 4H), batch-major

    # single packed parameter slab (one DMA)
    w_fc_pad = jnp.zeros((HID, H4), f32).at[:, :NP].set(params["w_fc"])
    b_fc_pad = jnp.zeros((1, H4), f32).at[:, :NP].set(params["b_fc"])
    ahat_pad = jnp.zeros((N_NODE, H4), f32).at[:, :N_NODE].set(a_hat_t)
    w2_pad = jnp.zeros((N_PRED, H4), f32).at[:, :FC].set(w2)
    zfill1 = jnp.zeros((R_AHAT - (R_BFC + 1), H4), f32)
    zfill2 = jnp.zeros((R_TOT - (R_W2 + N_PRED), H4), f32)
    pslab = jnp.concatenate(
        [params["w_ih"], params["w_hh"], w_fc_pad, bias_gall, b_fc_pad,
         zfill1, ahat_pad, w2_pad, zfill2], axis=0)              # (R_TOT, 4H)

    vmem = pl.BlockSpec(memory_space=pltpu.MemorySpace.VMEM)
    cost = pl.CostEstimate(flops=130_000, transcendentals=1_300,
                           bytes_accessed=66_000)

    flat = pl.pallas_call(
        dggnn_kernel,
        out_shape=jax.ShapeDtypeStruct((B, H4), jnp.float32),
        in_specs=[vmem, vmem],
        out_specs=vmem,
        cost_estimate=cost,
    )(xk, pslab)

    # glue: matches torch .view(batch, node_num, out_channels)
    return flat[:, :NP].reshape(B, N_NODE, N_PRED)


# ---------------------------- pure-JAX reference ----------------------------
def dggnn_reference(x, adj, p):
    xl = jnp.sum(x * p["w_lin"][0][None, None, None, :], axis=-1) + p["b_lin"][0, 0]
    a_hat = adj + (jnp.eye(N_NODE, dtype=jnp.float32) if SELF_LOOP else 0.0)
    mconv = jnp.einsum("nm,bcm,cp->bnp", a_hat, xl, p["w_g"]) + p["b_g"][0]  # (B,N,P)
    seq = jnp.transpose(mconv, (0, 2, 1))                                    # (B,P,N)
    h = jnp.zeros((B, HID), jnp.float32)
    c = jnp.zeros((B, HID), jnp.float32)
    for t in range(N_PRED):
        gates = seq[:, t, :] @ p["w_ih"] + h @ p["w_hh"] + (p["b_ih"] + p["b_hh"])[0]
        i_g = jax.nn.sigmoid(gates[:, 0 * HID:1 * HID])
        f_g = jax.nn.sigmoid(gates[:, 1 * HID:2 * HID])
        g_g = jnp.tanh(gates[:, 2 * HID:3 * HID])
        o_g = jax.nn.sigmoid(gates[:, 3 * HID:4 * HID])
        c = f_g * c + i_g * g_g
        h = o_g * jnp.tanh(c)
    out = h @ p["w_fc"] + p["b_fc"][0]
    return out.reshape(B, N_NODE, N_PRED)


# ------------------------------ param init ----------------------------------
def init_params(key):
    ks = jax.random.split(key, 12)
    s = 0.1
    p = {
        "w_lin": jax.random.normal(ks[0], (1, FEAT), jnp.float32) * s,
        "b_lin": jax.random.normal(ks[1], (1, 1), jnp.float32) * s,
        "w_g":   jax.random.normal(ks[2], (C_HIS, N_PRED), jnp.float32) * s,
        "b_g":   jax.random.normal(ks[3], (1, N_PRED), jnp.float32) * s,
        # stored pre-transposed: (input, 4H) / (hidden, 4H); gate order i,f,g,o
        "w_ih":  jax.random.normal(ks[4], (N_NODE, 4 * HID), jnp.float32) * s,
        "w_hh":  jax.random.normal(ks[5], (HID, 4 * HID), jnp.float32) * s,
        "b_ih":  jax.random.normal(ks[6], (1, 4 * HID), jnp.float32) * s,
        "b_hh":  jax.random.normal(ks[7], (1, 4 * HID), jnp.float32) * s,
        # fc pre-transposed: (H, N * n_pred)
        "w_fc":  jax.random.normal(ks[8], (HID, N_NODE * N_PRED), jnp.float32) * s,
        "b_fc":  jax.random.normal(ks[9], (1, N_NODE * N_PRED), jnp.float32) * s,
    }
    if not ENABLE_BIAS:
        for k in ("b_lin", "b_g", "b_ih", "b_hh", "b_fc"):
            p[k] = jnp.zeros_like(p[k])
    return p


# --------------------------------- main --------------------------------------
if __name__ == "__main__":
    key = jax.random.PRNGKey(0)
    k_x, k_adj, k_p = jax.random.split(key, 3)

    x = jax.random.normal(k_x, (B, C_HIS, N_NODE, FEAT), jnp.float32)
    adj = jax.random.uniform(k_adj, (N_NODE, N_NODE), jnp.float32)
    params = init_params(k_p)

    pred = dggnn_forward(x, adj, params)
    pred = jax.block_until_ready(pred)

    ref = dggnn_reference(x, adj, params)
    assert pred.shape == (B, N_NODE, N_PRED)
    assert jnp.allclose(pred, ref, atol=1e-4, rtol=1e-4), "mismatch vs JAX reference"

    print("KERNEL_OK")
</pallas_src>

<mosaic_0001>
module attributes {stable_mosaic.version = 11 : i64} {
  func.func @dggnn_kernel(%arg0: memref<32x32xf32, #tpu.memory_space<vmem>>, %arg1: memref<120x128xf32, #tpu.memory_space<vmem>>, %arg2: memref<2x128xf32, #tpu.memory_space<vmem>>) attributes {dimension_semantics = [], scalar_prefetch = 0 : i64, scratch_operands = 0 : i64, tpu.core_type = #tpu.core_type<tc>} {
    %c112 = arith.constant 112 : index
    %c0 = arith.constant 0 : index
    %0 = vector.load %arg1[%c112, %c0] : memref<120x128xf32, #tpu.memory_space<vmem>>, vector<4x32xf32>
    %c0_0 = arith.constant 0 : index
    %c0_1 = arith.constant 0 : index
    %1 = vector.load %arg0[%c0_0, %c0_1] : memref<32x32xf32, #tpu.memory_space<vmem>>, vector<32x32xf32>
    %cst = arith.constant dense<0.000000e+00> : vector<4x32xf32>
    %2 = tpu.matmul %0, %1, %cst {dimension_numbers = #tpu.dot_dimension_numbers<[1], [0], [0], [1], [0, 0, 1, 1], [], []>} : vector<4x32xf32>, vector<32x32xf32>, vector<4x32xf32> -> vector<4x32xf32>
    %3 = vector.extract_strided_slice %2 {offsets = [0, 0], sizes = [4, 16], strides = [1, 1]} : vector<4x32xf32> to vector<4x16xf32>
    %4 = vector.extract_strided_slice %2 {offsets = [0, 16], sizes = [4, 16], strides = [1, 1]} : vector<4x32xf32> to vector<4x16xf32>
    %5 = tpu.concatenate %3, %4 in 0 : vector<4x16xf32>, vector<4x16xf32> -> vector<8x16xf32>
    %c96 = arith.constant 96 : index
    %c0_2 = arith.constant 0 : index
    %6 = vector.load %arg1[%c96, %c0_2] : memref<120x128xf32, #tpu.memory_space<vmem>>, vector<16x16xf32>
    %cst_3 = arith.constant dense<0.000000e+00> : vector<8x16xf32>
    %7 = tpu.matmul %5, %6, %cst_3 {dimension_numbers = #tpu.dot_dimension_numbers<[1], [0], [0], [1], [0, 0, 1, 1], [], []>} : vector<8x16xf32>, vector<16x16xf32>, vector<8x16xf32> -> vector<8x16xf32>
    %c0_4 = arith.constant 0 : index
    %c0_5 = arith.constant 0 : index
    %8 = vector.load %arg1[%c0_4, %c0_5] : memref<120x128xf32, #tpu.memory_space<vmem>>, vector<16x128xf32>
    %c80 = arith.constant 80 : index
    %c0_6 = arith.constant 0 : index
    %9 = vector.load %arg1[%c80, %c0_6] : memref<120x128xf32, #tpu.memory_space<vmem>>, vector<8x128xf32>
    %cst_7 = arith.constant dense<0.000000e+00> : vector<8x128xf32>
    %10 = tpu.matmul %7, %8, %cst_7 {dimension_numbers = #tpu.dot_dimension_numbers<[1], [0], [0], [1], [0, 0, 1, 1], [], []>} : vector<8x16xf32>, vector<16x128xf32>, vector<8x128xf32> -> vector<8x128xf32>
    %11 = arith.addf %10, %9 : vector<8x128xf32>
    %c16 = arith.constant 16 : index
    %c0_8 = arith.constant 0 : index
    %12 = vector.load %arg1[%c16, %c0_8] : memref<120x128xf32, #tpu.memory_space<vmem>>, vector<32x128xf32>
    %cst_9 = arith.constant 0.000000e+00 : f32
    %13 = vector.broadcast %cst_9 : f32 to vector<2x32xf32>
    %cst_10 = arith.constant 0.000000e+00 : f32
    %14 = vector.broadcast %cst_10 : f32 to vector<2x32xf32>
    %15 = vector.extract_strided_slice %11 {offsets = [0, 0], sizes = [1, 128], strides = [1, 1]} : vector<8x128xf32> to vector<1x128xf32>
    %16 = vector.extract_strided_slice %11 {offsets = [4, 0], sizes = [1, 128], strides = [1, 1]} : vector<8x128xf32> to vector<1x128xf32>
    %17 = tpu.concatenate %15, %16 in 0 : vector<1x128xf32>, vector<1x128xf32> -> vector<2x128xf32>
    %cst_11 = arith.constant dense<0.000000e+00> : vector<2x128xf32>
    %18 = tpu.matmul %13, %12, %cst_11 {dimension_numbers = #tpu.dot_dimension_numbers<[1], [0], [0], [1], [0, 0, 1, 1], [], []>} : vector<2x32xf32>, vector<32x128xf32>, vector<2x128xf32> -> vector<2x128xf32>
    %19 = arith.addf %17, %18 : vector<2x128xf32>
    %20 = vector.extract_strided_slice %19 {offsets = [0, 0], sizes = [2, 32], strides = [1, 1]} : vector<2x128xf32> to vector<2x32xf32>
    %21 = arith.negf %20 : vector<2x32xf32>
    %22 = math.exp %21 : vector<2x32xf32>
    %cst_12 = arith.constant 1.000000e+00 : f32
    %23 = vector.broadcast %cst_12 : f32 to vector<2x32xf32>
    %24 = arith.addf %23, %22 : vector<2x32xf32>
    %25 = arith.divf %23, %24 : vector<2x32xf32>
    %26 = vector.extract_strided_slice %19 {offsets = [0, 32], sizes = [2, 32], strides = [1, 1]} : vector<2x128xf32> to vector<2x32xf32>
    %27 = arith.negf %26 : vector<2x32xf32>
    %28 = math.exp %27 : vector<2x32xf32>
    %cst_13 = arith.constant 1.000000e+00 : f32
    %29 = vector.broadcast %cst_13 : f32 to vector<2x32xf32>
    %30 = arith.addf %29, %28 : vector<2x32xf32>
    %31 = arith.divf %29, %30 : vector<2x32xf32>
    %32 = vector.extract_strided_slice %19 {offsets = [0, 64], sizes = [2, 32], strides = [1, 1]} : vector<2x128xf32> to vector<2x32xf32>
    %33 = math.tanh %32 : vector<2x32xf32>
    %34 = vector.extract_strided_slice %19 {offsets = [0, 96], sizes = [2, 32], strides = [1, 1]} : vector<2x128xf32> to vector<2x32xf32>
    %35 = arith.negf %34 : vector<2x32xf32>
    %36 = math.exp %35 : vector<2x32xf32>
    %cst_14 = arith.constant 1.000000e+00 : f32
    %37 = vector.broadcast %cst_14 : f32 to vector<2x32xf32>
    %38 = arith.addf %37, %36 : vector<2x32xf32>
    %39 = arith.divf %37, %38 : vector<2x32xf32>
    %40 = arith.mulf %31, %14 : vector<2x32xf32>
    %41 = arith.mulf %25, %33 : vector<2x32xf32>
    %42 = arith.addf %40, %41 : vector<2x32xf32>
    %43 = math.tanh %42 : vector<2x32xf32>
    %44 = arith.mulf %39, %43 : vector<2x32xf32>
    %45 = vector.extract_strided_slice %11 {offsets = [1, 0], sizes = [1, 128], strides = [1, 1]} : vector<8x128xf32> to vector<1x128xf32>
    %46 = vector.extract_strided_slice %11 {offsets = [5, 0], sizes = [1, 128], strides = [1, 1]} : vector<8x128xf32> to vector<1x128xf32>
    %47 = tpu.concatenate %45, %46 in 0 : vector<1x128xf32>, vector<1x128xf32> -> vector<2x128xf32>
    %cst_15 = arith.constant dense<0.000000e+00> : vector<2x128xf32>
    %48 = tpu.matmul %44, %12, %cst_15 {dimension_numbers = #tpu.dot_dimension_numbers<[1], [0], [0], [1], [0, 0, 1, 1], [], []>} : vector<2x32xf32>, vector<32x128xf32>, vector<2x128xf32> -> vector<2x128xf32>
    %49 = arith.addf %47, %48 : vector<2x128xf32>
    %50 = vector.extract_strided_slice %49 {offsets = [0, 0], sizes = [2, 32], strides = [1, 1]} : vector<2x128xf32> to vector<2x32xf32>
    %51 = arith.negf %50 : vector<2x32xf32>
    %52 = math.exp %51 : vector<2x32xf32>
    %cst_16 = arith.constant 1.000000e+00 : f32
    %53 = vector.broadcast %cst_16 : f32 to vector<2x32xf32>
    %54 = arith.addf %53, %52 : vector<2x32xf32>
    %55 = arith.divf %53, %54 : vector<2x32xf32>
    %56 = vector.extract_strided_slice %49 {offsets = [0, 32], sizes = [2, 32], strides = [1, 1]} : vector<2x128xf32> to vector<2x32xf32>
    %57 = arith.negf %56 : vector<2x32xf32>
    %58 = math.exp %57 : vector<2x32xf32>
    %cst_17 = arith.constant 1.000000e+00 : f32
    %59 = vector.broadcast %cst_17 : f32 to vector<2x32xf32>
    %60 = arith.addf %59, %58 : vector<2x32xf32>
    %61 = arith.divf %59, %60 : vector<2x32xf32>
    %62 = vector.extract_strided_slice %49 {offsets = [0, 64], sizes = [2, 32], strides = [1, 1]} : vector<2x128xf32> to vector<2x32xf32>
    %63 = math.tanh %62 : vector<2x32xf32>
    %64 = vector.extract_strided_slice %49 {offsets = [0, 96], sizes = [2, 32], strides = [1, 1]} : vector<2x128xf32> to vector<2x32xf32>
    %65 = arith.negf %64 : vector<2x32xf32>
    %66 = math.exp %65 : vector<2x32xf32>
    %cst_18 = arith.constant 1.000000e+00 : f32
    %67 = vector.broadcast %cst_18 : f32 to vector<2x32xf32>
    %68 = arith.addf %67, %66 : vector<2x32xf32>
    %69 = arith.divf %67, %68 : vector<2x32xf32>
    %70 = arith.mulf %61, %42 : vector<2x32xf32>
    %71 = arith.mulf %55, %63 : vector<2x32xf32>
    %72 = arith.addf %70, %71 : vector<2x32xf32>
    %73 = math.tanh %72 : vector<2x32xf32>
    %74 = arith.mulf %69, %73 : vector<2x32xf32>
    %75 = vector.extract_strided_slice %11 {offsets = [2, 0], sizes = [1, 128], strides = [1, 1]} : vector<8x128xf32> to vector<1x128xf32>
    %76 = vector.extract_strided_slice %11 {offsets = [6, 0], sizes = [1, 128], strides = [1, 1]} : vector<8x128xf32> to vector<1x128xf32>
    %77 = tpu.concatenate %75, %76 in 0 : vector<1x128xf32>, vector<1x128xf32> -> vector<2x128xf32>
    %cst_19 = arith.constant dense<0.000000e+00> : vector<2x128xf32>
    %78 = tpu.matmul %74, %12, %cst_19 {dimension_numbers = #tpu.dot_dimension_numbers<[1], [0], [0], [1], [0, 0, 1, 1], [], []>} : vector<2x32xf32>, vector<32x128xf32>, vector<2x128xf32> -> vector<2x128xf32>
    %79 = arith.addf %77, %78 : vector<2x128xf32>
    %80 = vector.extract_strided_slice %79 {offsets = [0, 0], sizes = [2, 32], strides = [1, 1]} : vector<2x128xf32> to vector<2x32xf32>
    %81 = arith.negf %80 : vector<2x32xf32>
    %82 = math.exp %81 : vector<2x32xf32>
    %cst_20 = arith.constant 1.000000e+00 : f32
    %83 = vector.broadcast %cst_20 : f32 to vector<2x32xf32>
    %84 = arith.addf %83, %82 : vector<2x32xf32>
    %85 = arith.divf %83, %84 : vector<2x32xf32>
    %86 = vector.extract_strided_slice %79 {offsets = [0, 32], sizes = [2, 32], strides = [1, 1]} : vector<2x128xf32> to vector<2x32xf32>
    %87 = arith.negf %86 : vector<2x32xf32>
    %88 = math.exp %87 : vector<2x32xf32>
    %cst_21 = arith.constant 1.000000e+00 : f32
    %89 = vector.broadcast %cst_21 : f32 to vector<2x32xf32>
    %90 = arith.addf %89, %88 : vector<2x32xf32>
    %91 = arith.divf %89, %90 : vector<2x32xf32>
    %92 = vector.extract_strided_slice %79 {offsets = [0, 64], sizes = [2, 32], strides = [1, 1]} : vector<2x128xf32> to vector<2x32xf32>
    %93 = math.tanh %92 : vector<2x32xf32>
    %94 = vector.extract_strided_slice %79 {offsets = [0, 96], sizes = [2, 32], strides = [1, 1]} : vector<2x128xf32> to vector<2x32xf32>
    %95 = arith.negf %94 : vector<2x32xf32>
    %96 = math.exp %95 : vector<2x32xf32>
    %cst_22 = arith.constant 1.000000e+00 : f32
    %97 = vector.broadcast %cst_22 : f32 to vector<2x32xf32>
    %98 = arith.addf %97, %96 : vector<2x32xf32>
    %99 = arith.divf %97, %98 : vector<2x32xf32>
    %100 = arith.mulf %91, %72 : vector<2x32xf32>
    %101 = arith.mulf %85, %93 : vector<2x32xf32>
    %102 = arith.addf %100, %101 : vector<2x32xf32>
    %103 = math.tanh %102 : vector<2x32xf32>
    %104 = arith.mulf %99, %103 : vector<2x32xf32>
    %105 = vector.extract_strided_slice %11 {offsets = [3, 0], sizes = [1, 128], strides = [1, 1]} : vector<8x128xf32> to vector<1x128xf32>
    %106 = vector.extract_strided_slice %11 {offsets = [7, 0], sizes = [1, 128], strides = [1, 1]} : vector<8x128xf32> to vector<1x128xf32>
    %107 = tpu.concatenate %105, %106 in 0 : vector<1x128xf32>, vector<1x128xf32> -> vector<2x128xf32>
    %cst_23 = arith.constant dense<0.000000e+00> : vector<2x128xf32>
    %108 = tpu.matmul %104, %12, %cst_23 {dimension_numbers = #tpu.dot_dimension_numbers<[1], [0], [0], [1], [0, 0, 1, 1], [], []>} : vector<2x32xf32>, vector<32x128xf32>, vector<2x128xf32> -> vector<2x128xf32>
    %109 = arith.addf %107, %108 : vector<2x128xf32>
    %110 = vector.extract_strided_slice %109 {offsets = [0, 0], sizes = [2, 32], strides = [1, 1]} : vector<2x128xf32> to vector<2x32xf32>
    %111 = arith.negf %110 : vector<2x32xf32>
    %112 = math.exp %111 : vector<2x32xf32>
    %cst_24 = arith.constant 1.000000e+00 : f32
    %113 = vector.broadcast %cst_24 : f32 to vector<2x32xf32>
    %114 = arith.addf %113, %112 : vector<2x32xf32>
    %115 = arith.divf %113, %114 : vector<2x32xf32>
    %116 = vector.extract_strided_slice %109 {offsets = [0, 32], sizes = [2, 32], strides = [1, 1]} : vector<2x128xf32> to vector<2x32xf32>
    %117 = arith.negf %116 : vector<2x32xf32>
    %118 = math.exp %117 : vector<2x32xf32>
    %cst_25 = arith.constant 1.000000e+00 : f32
    %119 = vector.broadcast %cst_25 : f32 to vector<2x32xf32>
    %120 = arith.addf %119, %118 : vector<2x32xf32>
    %121 = arith.divf %119, %120 : vector<2x32xf32>
    %122 = vector.extract_strided_slice %109 {offsets = [0, 64], sizes = [2, 32], strides = [1, 1]} : vector<2x128xf32> to vector<2x32xf32>
    %123 = math.tanh %122 : vector<2x32xf32>
    %124 = vector.extract_strided_slice %109 {offsets = [0, 96], sizes = [2, 32], strides = [1, 1]} : vector<2x128xf32> to vector<2x32xf32>
    %125 = arith.negf %124 : vector<2x32xf32>
    %126 = math.exp %125 : vector<2x32xf32>
    %cst_26 = arith.constant 1.000000e+00 : f32
    %127 = vector.broadcast %cst_26 : f32 to vector<2x32xf32>
    %128 = arith.addf %127, %126 : vector<2x32xf32>
    %129 = arith.divf %127, %128 : vector<2x32xf32>
    %130 = arith.mulf %121, %102 : vector<2x32xf32>
    %131 = arith.mulf %115, %123 : vector<2x32xf32>
    %132 = arith.addf %130, %131 : vector<2x32xf32>
    %133 = math.tanh %132 : vector<2x32xf32>
    %134 = arith.mulf %129, %133 : vector<2x32xf32>
    %c48 = arith.constant 48 : index
    %c0_27 = arith.constant 0 : index
    %135 = vector.load %arg1[%c48, %c0_27] : memref<120x128xf32, #tpu.memory_space<vmem>>, vector<32x128xf32>
    %c88 = arith.constant 88 : index
    %c0_28 = arith.constant 0 : index
    %136 = vector.load %arg1[%c88, %c0_28] : memref<120x128xf32, #tpu.memory_space<vmem>>, vector<1x128xf32>
    %cst_29 = arith.constant dense<0.000000e+00> : vector<2x128xf32>
    %137 = tpu.matmul %134, %135, %cst_29 {dimension_numbers = #tpu.dot_dimension_numbers<[1], [0], [0], [1], [0, 0, 1, 1], [], []>} : vector<2x32xf32>, vector<32x128xf32>, vector<2x128xf32> -> vector<2x128xf32>
    %138 = vector.broadcast %136 : vector<1x128xf32> to vector<2x128xf32>
    %139 = arith.addf %137, %138 : vector<2x128xf32>
    %c0_30 = arith.constant 0 : index
    %c0_31 = arith.constant 0 : index
    %140 = vector.load %arg2[%c0_30, %c0_31] : memref<2x128xf32, #tpu.memory_space<vmem>>, vector<2x128xf32>
    tpu.vector_store %arg2[%c0_30, %c0_31], %139 {strides = array<i32>} : memref<2x128xf32, #tpu.memory_space<vmem>>, vector<2x128xf32>,
    return
  }
}

</mosaic_0001>

<bundles_post_ra>
// kernel: dggnn_forward.1
= control target key start
LH: loop header
LB: loop body
LE: loop exit
PB: predicated region body
PF: predicated region fallthrough
CT: control target
= control target key end

     0   :  { %vm16_vm0 = vcmask 261120   ;;  %s455_s21 = smov 112   ;;  %vm45_vm1 = vcmask 1043456   ;;  %vm49_vm2 = vcmask 130048   ;;  %v456_v17 = vmov 0.0   ;;  %s457_s9 = smov 64   ;;  %s563_s0 = inlined_call_operand.vmem [shape: f32[32,32], index: 0, kind: input, shape index: {}]   ;;  %s564_s1 = inlined_call_operand.vmem [shape: f32[120,128], index: 1, kind: input, shape index: {}]   ;;  %s565_s2 = inlined_call_operand.vmem [shape: f32[2,128], index: 2, kind: output, shape index: {}]  }
   0x1   :  { %v15_v0 = vld [vmem:[%s563_s0 + $0x18] sm:$0xff]  ;;  %v14_v1 = vld [vmem:[%s563_s0 + $0x10] sm:$0xff]  ;;  %v13_v2 = vld [vmem:[%s563_s0 + $0x8] sm:$0xff]  ;;  %vm106_vm3 = vcmask 1040384   ;;  %s458_s10 = smov 32  }
   0x2   :  { %32 = vmatpush.msra.mxu0 %v15_v0  ;;  %v12_v3 = vld [vmem:[%s563_s0] sm:$0xff]  ;;  %v11_v4 = vld [vmem:[%s564_s1 + $0x70] sm:$0xf]  ;;  %v48_v5 = vld [vmem:[%s564_s1 + $0x68] sm:$0xff] }
   0x3   :  { %67 = vmatpush.msra.mxu1 %v48_v5  ;;  %v47_v8 = vld [vmem:[%s564_s1 + $0x60] sm:$0xff]  ;;  %v74_v9 = vld [vmem:[%s564_s1 + $0x8] sm:$0xff]  ;;  %v100_v15 = vld [vmem:[%s564_s1 + $0x18] sm:$0xff] }
   0x4   :  { %33 = vmatpush.msra.mxu0 %v14_v1  ;;  %v102_v10 = vld [vmem:[%s564_s1 + $0x28] sm:$0xff]  ;;  %93 = vmatpush.msra.mxu2 %v74_v9  ;;  %v73_v13 = vld [vmem:[%s564_s1] sm:$0xff]  ;;  %v99_v16 = vld [vmem:[%s564_s1 + $0x10] sm:$0xff] }
   0x5   :  { %68 = vmatpush.msra.mxu1 %v47_v8  ;;  %123 = vmatpush.msra.mxu3 %v102_v10  ;;  %v101_v14 = vld [vmem:[%s564_s1 + $0x20] sm:$0xff]  ;;  %v75_v19 = vld [vmem:[%s564_s1 + $0x50] sm:$0xff] }
   0x6   :  { %34 = vmatpush.msra.mxu0 %v13_v2  ;;  %94 = vmatpush.msra.mxu2 %v73_v13 }
   0x7   :  { %191 = vmatpush.msrb.mxu1 %v102_v10  ;;  %124 = vmatpush.msra.mxu3 %v101_v14 }
   0x8   :  { %35 = vmatpush.msra.mxu0 %v12_v3  ;;  %259 = vmatpush.msrb.mxu2 %v102_v10 }
   0x9   :  { %407 = vmatmul.msk.f32.vlgmr.msra.gmra.mxu0 %vm16_vm0, %v11_v4  ;;  %192 = vmatpush.msrb.mxu1 %v101_v14 }
   0xa   :  { %325 = vmatpush.msrb.mxu0 %v102_v10  ;;  %125 = vmatpush.msra.mxu3 %v100_v15 }
   0xb   :  { %193 = vmatpush.msrb.mxu1 %v100_v15  ;;  %260 = vmatpush.msrb.mxu2 %v101_v14 }
   0xc   :  { %326 = vmatpush.msrb.mxu0 %v101_v14  ;;  %126 = vmatpush.msra.mxu3 %v99_v16 }
   0xd   :  { %194 = vmatpush.msrb.mxu1 %v99_v16  ;;  %127 = vmatmul.f32.vlgmr.msra.gmra.mxu3 %v456_v17 }
   0xe   :  { %327 = vmatpush.msrb.mxu0 %v100_v15  ;;  %261 = vmatpush.msrb.mxu2 %v100_v15 }
  0x10   :  { %328 = vmatpush.msrb.mxu0 %v99_v16  ;;  %262 = vmatpush.msrb.mxu2 %v99_v16 }
  0x86   :  { %v37_v6 = vpop.f32.mrf.mxu0 }
  0x87   :  { %v41_v7 = vrot.slane %v37_v6, 4 }
  0x89   :  { %42 = vrot.lane.b32.xlu0 %v41_v7, %s455_s21 }
  0x90   :  { %v128_v23 = vpop.f32.mrf.mxu3 }
  0xfb   :  { %v43_v11 = vpop.permute.xlu0 %42 }
  0xfc   :  { %v46_v12 = vsel %vm45_vm1, %v37_v6, %v43_v11 }
  0xfd   :  { %408 = vmatmul.msk.f32.vlgmr.msra.gmra.mxu1 %vm49_vm2, %v46_v12 }
 0x17a   :  { %v70_v18 = vpop.f32.mrf.mxu1 }
 0x17b   :  { %409 = vmatmul.msk.f32.vlgmr.msra.gmra.mxu2 %vm49_vm2, %v70_v18 }
 0x1fe   :  { %v96_v20 = vpop.f32.mrf.mxu2 }
 0x1ff   :  { %v97_v21 = vadd.f32 %v96_v20, %v75_v19 }
 0x201   :  { %v104_v22 = vrot.slane %v97_v21, 3  ;;  %v169_v24 = vrot.slane %v97_v21, 1  ;;  %v171_v25 = vrot.slane %v97_v21, 4  ;;  %v237_v26 = vrot.slane %v97_v21, 2 }
 0x202   :  { %v239_v27 = vrot.slane %v97_v21, 5  ;;  %v305_v28 = vrot.slane %v97_v21, 6 }
 0x203   :  { %v107_v29 = vsel %vm106_vm3, %v97_v21, %v104_v22  ;;  %v173_v30 = vsel %vm106_vm3, %v169_v24, %v171_v25 }
 0x204   :  { %v131_v31 = vadd.f32 %v128_v23, %v107_v29  ;;  %v519_v32 = vsel %vm106_vm3, %v237_v26, %v239_v27  ;;  %v521_v33 = vsel %vm106_vm3, %v104_v22, %v305_v28 }
 0x206   :  { %423 = vtanh.f32 %v131_v31  ;;  %v410_v35 = vmul.f32 -1.442695, %v131_v31 }
 0x208   :  { %425 = vpow2.f32 %v410_v35 }
 0x20c   :  { %v424_v34 = vpop.eup %423 }
 0x20d   :  { %154 = vrot.lane.b32.xlu0 %v424_v34, %s457_s9 }
 0x20e   :  { %v426_v36 = vpop.eup %425 }
 0x20f   :  { %v135_v37 = vadd.f32 1.0, %v426_v36 }
 0x211   :  { %427 = vrcp.f32 %v135_v37  ;;  %v147_v43 = vand.u32 2147483648, %v135_v37  ;;  %vm141_vm5 = vweird.f32 %v135_v37  ;;  %v145_v44 = vand.u32 2147483647, %v135_v37 }
 0x213   :  { %v148_v46 = vor.u32 1.1754944e-38, %v147_v43  ;;  %vm146_vm7 = vcmp.eq.f32.partialorder %v145_v44, 8.507059e+37 }
 0x217   :  { %v428_v38 = vpop.eup %427 }
 0x218   :  { %v137_v39 = vmul.f32 %v428_v38, %v135_v37  ;;  %vm142_vm4 = vweird.f32 %v428_v38 }
 0x219   :  { %vm143_vm6 = vmor %vm141_vm5, %vm142_vm4 }
 0x21a   :  { %v138_v40 = vsub.f32 1.0, %v137_v39 }
 0x21c   :  { %v139_v41 = vmul.f32 %v428_v38, %v138_v40 }
 0x21e   :  { %v140_v42 = vadd.f32 %v428_v38, %v139_v41 }
 0x220   :  { %v144_v45 = vsel %vm143_vm6, %v428_v38, %v140_v42 }
 0x221   :  { %v149_v48 = vsel %vm146_vm7, %v148_v46, %v144_v45 }
 0x222   :  { %v152_v50 = vmul.f32 0.0, %v149_v48 }
 0x27f   :  { %v155_v47 = vpop.permute.xlu0 %154 }
 0x280   :  { %v157_v49 = vmul.f32 %v155_v47, %v149_v48 }
 0x282   :  { %159 = vrot.lane.b32.xlu1 %v157_v49, %s458_s10 }
 0x2f4   :  { %v160_v51 = vpop.permute.xlu1 %159 }
 0x2f5   :  { %v162_v52 = vadd.f32 %v160_v51, %v152_v50 }
 0x2f7   :  { %429 = vtanh.f32 %v162_v52 }
 0x2fd   :  { %v430_v53 = vpop.eup %429 }
 0x2fe   :  { %165 = vrot.lane.b32.xlu1 %v430_v53, %s457_s9 }
 0x370   :  { %v166_v54 = vpop.permute.xlu1 %165 }
 0x371   :  { %v168_v55 = vmul.f32 %v166_v54, %v149_v48 }
 0x373   :  { %175 = vrot.lane.b32.xlu2 %v168_v55, %s458_s10 }
 0x3cd   :  { %v176_v56 = vpop.permute.xlu2 %175 }
 0x3ce   :  { %411 = vmatmul.msk.f32.vlgmr.msrb.gmra.mxu1 %vm16_vm0, %v176_v56 }
 0x44b   :  { %v196_v57 = vpop.f32.mrf.mxu1 }
 0x44c   :  { %v199_v58 = vadd.f32 %v196_v57, %v173_v30 }
 0x44e   :  { %431 = vtanh.f32 %v199_v58  ;;  %v412_v60 = vmul.f32 -1.442695, %v199_v58 }
 0x450   :  { %433 = vpow2.f32 %v412_v60 }
 0x454   :  { %v432_v59 = vpop.eup %431 }
 0x455   :  { %222 = vrot.lane.b32.xlu2 %v432_v59, %s457_s9 }
 0x456   :  { %v434_v61 = vpop.eup %433 }
 0x457   :  { %v203_v62 = vadd.f32 1.0, %v434_v61 }
 0x459   :  { %435 = vrcp.f32 %v203_v62  ;;  %v215_v4 = vand.u32 2147483648, %v203_v62  ;;  %vm209_vm9 = vweird.f32 %v203_v62  ;;  %v213_v5 = vand.u32 2147483647, %v203_v62 }
 0x45b   :  { %v216_v7 = vor.u32 1.1754944e-38, %v215_v4  ;;  %vm214_vm11 = vcmp.eq.f32.partialorder %v213_v5, 8.507059e+37  ;;  %v371_v4 = vld [vmem:[%s564_s1 + $0x30] sm:$0xff] }
 0x45f   :  { %v436_v63 = vpop.eup %435 }
 0x460   :  { %v205_v0 = vmul.f32 %v436_v63, %v203_v62  ;;  %vm210_vm8 = vweird.f32 %v436_v63 }
 0x461   :  { %vm211_vm10 = vmor %vm209_vm9, %vm210_vm8 }
 0x462   :  { %v206_v1 = vsub.f32 1.0, %v205_v0 }
 0x464   :  { %v207_v2 = vmul.f32 %v436_v63, %v206_v1  ;;  %v374_v1 = vld [vmem:[%s564_s1 + $0x48] sm:$0xff] }
 0x465   :  { %394 = vmatpush.msrb.mxu3 %v374_v1 }
 0x466   :  { %v208_v3 = vadd.f32 %v436_v63, %v207_v2  ;;  %v373_v2 = vld [vmem:[%s564_s1 + $0x40] sm:$0xff] }
 0x467   :  { %395 = vmatpush.msrb.mxu3 %v373_v2 }
 0x468   :  { %v212_v6 = vsel %vm211_vm10, %v436_v63, %v208_v3  ;;  %v372_v3 = vld [vmem:[%s564_s1 + $0x38] sm:$0xff] }
 0x469   :  { %v217_v9 = vsel %vm214_vm11, %v216_v7, %v212_v6  ;;  %396 = vmatpush.msrb.mxu3 %v372_v3 }
 0x46a   :  { %v220_v11 = vmul.f32 %v217_v9, %v162_v52 }
 0x46b   :  { %397 = vmatpush.msrb.mxu3 %v371_v4 }
 0x4af   :  { %v223_v8 = vpop.permute.xlu2 %222 }
 0x4b0   :  { %v225_v10 = vmul.f32 %v223_v8, %v217_v9  ;;  %v422_v8 = vld [vmem:[%s564_s1 + $0x58] ss:$0 sm:$0xff] }
 0x4b2   :  { %227 = vrot.lane.b32.xlu0 %v225_v10, %s458_s10 }
 0x524   :  { %v228_v12 = vpop.permute.xlu0 %227 }
 0x525   :  { %v230_v13 = vadd.f32 %v228_v12, %v220_v11 }
 0x527   :  { %437 = vtanh.f32 %v230_v13 }
 0x52d   :  { %v438_v14 = vpop.eup %437 }
 0x52e   :  { %233 = vrot.lane.b32.xlu1 %v438_v14, %s457_s9 }
 0x5a0   :  { %v234_v15 = vpop.permute.xlu1 %233 }
 0x5a1   :  { %v236_v16 = vmul.f32 %v234_v15, %v217_v9 }
 0x5a3   :  { %243 = vrot.lane.b32.xlu2 %v236_v16, %s458_s10 }
 0x5fd   :  { %v244_v17 = vpop.permute.xlu2 %243 }
 0x5fe   :  { %413 = vmatmul.msk.f32.vlgmr.msrb.gmra.mxu2 %vm16_vm0, %v244_v17 }
 0x681   :  { %v264_v18 = vpop.f32.mrf.mxu2 }
 0x682   :  { %v267_v19 = vadd.f32 %v264_v18, %v519_v32 }
 0x684   :  { %439 = vtanh.f32 %v267_v19  ;;  %v414_v21 = vmul.f32 -1.442695, %v267_v19 }
 0x686   :  { %441 = vpow2.f32 %v414_v21 }
 0x68a   :  { %v440_v20 = vpop.eup %439 }
 0x68b   :  { %290 = vrot.lane.b32.xlu0 %v440_v20, %s457_s9 }
 0x68c   :  { %v442_v22 = vpop.eup %441 }
 0x68d   :  { %v271_v23 = vadd.f32 1.0, %v442_v22 }
 0x68f   :  { %443 = vrcp.f32 %v271_v23  ;;  %v283_v29 = vand.u32 2147483648, %v271_v23  ;;  %vm277_vm13 = vweird.f32 %v271_v23  ;;  %v281_v30 = vand.u32 2147483647, %v271_v23 }
 0x691   :  { %v284_v32 = vor.u32 1.1754944e-38, %v283_v29  ;;  %vm282_vm15 = vcmp.eq.f32.partialorder %v281_v30, 8.507059e+37 }
 0x695   :  { %v444_v24 = vpop.eup %443 }
 0x696   :  { %v273_v25 = vmul.f32 %v444_v24, %v271_v23  ;;  %vm278_vm12 = vweird.f32 %v444_v24 }
 0x697   :  { %vm279_vm14 = vmor %vm277_vm13, %vm278_vm12 }
 0x698   :  { %v274_v26 = vsub.f32 1.0, %v273_v25 }
 0x69a   :  { %v275_v27 = vmul.f32 %v444_v24, %v274_v26 }
 0x69c   :  { %v276_v28 = vadd.f32 %v444_v24, %v275_v27 }
 0x69e   :  { %v280_v31 = vsel %vm279_vm14, %v444_v24, %v276_v28 }
 0x69f   :  { %v285_v35 = vsel %vm282_vm15, %v284_v32, %v280_v31 }
 0x6a0   :  { %v288_v37 = vmul.f32 %v285_v35, %v230_v13 }
 0x6fd   :  { %v291_v34 = vpop.permute.xlu0 %290 }
 0x6fe   :  { %v293_v36 = vmul.f32 %v291_v34, %v285_v35 }
 0x700   :  { %295 = vrot.lane.b32.xlu1 %v293_v36, %s458_s10 }
 0x772   :  { %v296_v38 = vpop.permute.xlu1 %295 }
 0x773   :  { %v298_v39 = vadd.f32 %v296_v38, %v288_v37 }
 0x775   :  { %445 = vtanh.f32 %v298_v39 }
 0x77b   :  { %v446_v40 = vpop.eup %445 }
 0x77c   :  { %301 = vrot.lane.b32.xlu2 %v446_v40, %s457_s9 }
 0x7d6   :  { %v302_v41 = vpop.permute.xlu2 %301 }
 0x7d7   :  { %v304_v42 = vmul.f32 %v302_v41, %v285_v35 }
 0x7d9   :  { %309 = vrot.lane.b32.xlu0 %v304_v42, %s458_s10 }
 0x84b   :  { %v310_v43 = vpop.permute.xlu0 %309 }
 0x84c   :  { %415 = vmatmul.msk.f32.vlgmr.msrb.gmra.mxu0 %vm16_vm0, %v310_v43 }
 0x8c9   :  { %v330_v44 = vpop.f32.mrf.mxu0 }
 0x8ca   :  { %v333_v45 = vadd.f32 %v330_v44, %v521_v33 }
 0x8cc   :  { %447 = vtanh.f32 %v333_v45  ;;  %v416_v47 = vmul.f32 -1.442695, %v333_v45 }
 0x8ce   :  { %449 = vpow2.f32 %v416_v47 }
 0x8d2   :  { %v448_v46 = vpop.eup %447 }
 0x8d3   :  { %356 = vrot.lane.b32.xlu1 %v448_v46, %s457_s9 }
 0x8d4   :  { %v450_v48 = vpop.eup %449 }
 0x8d5   :  { %v337_v49 = vadd.f32 1.0, %v450_v48 }
 0x8d7   :  { %451 = vrcp.f32 %v337_v49  ;;  %v349_v55 = vand.u32 2147483648, %v337_v49  ;;  %vm343_vm2 = vweird.f32 %v337_v49  ;;  %v347_v56 = vand.u32 2147483647, %v337_v49 }
 0x8d9   :  { %v350_v57 = vor.u32 1.1754944e-38, %v349_v55  ;;  %vm348_vm4 = vcmp.eq.f32.partialorder %v347_v56, 8.507059e+37 }
 0x8dd   :  { %v452_v50 = vpop.eup %451 }
 0x8de   :  { %v339_v51 = vmul.f32 %v452_v50, %v337_v49  ;;  %vm344_vm1 = vweird.f32 %v452_v50 }
 0x8df   :  { %vm345_vm3 = vmor %vm343_vm2, %vm344_vm1 }
 0x8e0   :  { %v340_v52 = vsub.f32 1.0, %v339_v51 }
 0x8e2   :  { %v341_v53 = vmul.f32 %v452_v50, %v340_v52 }
 0x8e4   :  { %v342_v54 = vadd.f32 %v452_v50, %v341_v53 }
 0x8e6   :  { %v346_v33 = vsel %vm345_vm3, %v452_v50, %v342_v54 }
 0x8e7   :  { %v351_v59 = vsel %vm348_vm4, %v350_v57, %v346_v33 }
 0x8e8   :  { %v354_v61 = vmul.f32 %v351_v59, %v298_v39 }
 0x945   :  { %v357_v58 = vpop.permute.xlu1 %356 }
 0x946   :  { %v359_v60 = vmul.f32 %v357_v58, %v351_v59 }
 0x948   :  { %361 = vrot.lane.b32.xlu2 %v359_v60, %s458_s10 }
 0x9a2   :  { %v362_v62 = vpop.permute.xlu2 %361 }
 0x9a3   :  { %v364_v63 = vadd.f32 %v362_v62, %v354_v61 }
 0x9a5   :  { %453 = vtanh.f32 %v364_v63 }
 0x9ab   :  { %v454_v0 = vpop.eup %453 }
 0x9ac   :  { %367 = vrot.lane.b32.xlu0 %v454_v0, %s457_s9 }
 0xa1e   :  { %v368_v5 = vpop.permute.xlu0 %367 }
 0xa1f   :  { %v370_v6 = vmul.f32 %v368_v5, %v351_v59 }
 0xa21   :  { %378 = vrot.lane.b32.xlu1 %v370_v6, %s458_s10 }
 0xa93   :  { %v379_v7 = vpop.permute.xlu1 %378 }
 0xa94   :  { %417 = vmatmul.msk.f32.vlgmr.msrb.gmra.mxu3 %vm16_vm0, %v379_v7 }
 0xb17   :  { %v399_v9 = vpop.f32.mrf.mxu3 }
 0xb18   :  { %v400_v10 = vadd.f32 %v422_v8, %v399_v9 }
 0xb1a   :  { %402 = vst [vmem:[%s565_s2] sm:$0x3] %v400_v10 }

</bundles_post_ra>
